<compile_context>
chip_gen: v7x
topology: tpu7x:2x2x1
jax: 0.10.0
libtpu: 0.0.40
codegen_flags: <defaults>
</compile_context>

<pallas_src>
import jax
import jax.numpy as jnp
from jax import lax
from jax.experimental import pallas as pl
from jax.experimental.pallas import tpu as pltpu


def _cdiv(a, b):
    return -(-a // b)


def _round_up(x, m):
    return _cdiv(x, m) * m


def critic_mlp_kernel(s_ref, a_ref, w1s_ref, w1a_ref, b1_ref,
                      w2_ref, b2_ref, w3_ref, b3_ref, q_ref):
    """Fused 3-layer MLP on one batch tile; activations are feature-major (batch on lanes).

    s_ref:   (tile_b, state_dim)       a_ref:   (tile_b, action_dim)
    w1s_ref: (nf, state_dim)  = W1_s^T w1a_ref: (nf, action_dim) = W1_a^T
    b1_ref:  (nf, 1)                   w2_ref:  (nf, nf) = W2^T    b2_ref: (nf, 1)
    w3_ref:  (n_out, nf) = W3^T        b3_ref:  (n_out, 1)
    q_ref:   (n_out, tile_b)   <-- batch on the lane axis (lane-dense store)
    """
    s = s_ref[...].astype(jnp.float32)          # (tile_b, state_dim)
    a = a_ref[...].astype(jnp.float32)          # (tile_b, action_dim)

    # Layer 1 (concat fused): h1^T = W1_s^T s^T + W1_a^T a^T + b1  -> (nf, tile_b).
    # dot_general contracts the trailing (feature) dims of both operands, i.e. the
    # A.B^T form the MXU handles natively -- no explicit transpose / relayout needed.
    c_last = (((1,), (1,)), ((), ()))
    h1 = lax.dot_general(w1s_ref[...], s, c_last, preferred_element_type=jnp.float32)
    h1 = h1 + lax.dot_general(w1a_ref[...], a, c_last, preferred_element_type=jnp.float32)
    h1 = jnp.maximum(h1 + b1_ref[...], 0.0)                                   # (nf, tile_b)

    # Layer 2: h2^T = W2^T h1^T + b2  (feature-major stays feature-major).
    h2 = jnp.dot(w2_ref[...], h1, preferred_element_type=jnp.float32) + b2_ref[...]
    h2 = jnp.maximum(h2, 0.0)                                                 # (nf, tile_b)

    # Layer 3: q = W3^T h2^T + b3 -> (n_out, tile_b), lane-dense output store.
    q = jnp.dot(w3_ref[...], h2, preferred_element_type=jnp.float32) + b3_ref[...]
    q_ref[...] = q.astype(q_ref.dtype)


def _choose_tiling(B, tile_b=None):
    """Returns (tile_b, num_tiles). Multi-tile tiles are multiples of 128 (lane-dense)."""
    if tile_b is not None:
        tile_b = int(tile_b)
        if tile_b >= B:
            return B, 1
        tile_b = max(128, _round_up(tile_b, 128))
        if tile_b >= B:
            return B, 1
        return tile_b, _cdiv(B, tile_b)
    if B <= 256:
        return B, 1
    # 128-aligned tiles, <=512 rows each, >=2 grid steps.  Priority: minimal padded
    # columns (wasted compute / stores on every chip) > even tile count (v7x: 2 TCs)
    # > larger tile (fewer per-step overheads).
    n128 = _cdiv(B, 128)
    best = None
    for bpt in (1, 2, 3, 4):                 # blocks of 128 rows per tile
        nt = _cdiv(n128, bpt)
        if nt < 2:
            continue
        pad = nt * bpt * 128 - B
        key = (pad, nt % 2, -bpt)
        if best is None or key < best[0]:
            best = (key, bpt * 128, nt)
    _, tb, nt = best
    return tb, nt


def critic_forward(state, action, params, *, tile_b=None):
    w1, b1, w2, b2, w3, b3 = params
    B, state_dim = state.shape
    action_dim = action.shape[1]
    nf = w1.shape[1]
    n_out = w3.shape[1]

    # One-time tiny weight prep (~6 KB): split W1 across the state/action concat and
    # transpose everything so the kernel runs feature-major with the batch on lanes.
    w1s_t = w1[:state_dim].T                             # (nf, state_dim)
    w1a_t = w1[state_dim:state_dim + action_dim].T       # (nf, action_dim)
    w2_t = w2.T                                          # (nf, nf)
    w3_t = w3.T                                          # (n_out, nf)
    b1_c = jnp.reshape(b1, (nf, 1))
    b2_c = jnp.reshape(b2, (nf, 1))
    b3_c = jnp.reshape(b3, (n_out, 1))

    tile_b, num_tiles = _choose_tiling(B, tile_b)
    B_pad = num_tiles * tile_b                           # only the OUTPUT is padded

    q2d = pl.pallas_call(
        critic_mlp_kernel,
        out_shape=jax.ShapeDtypeStruct((n_out, B_pad), jnp.float32),
        grid_spec=pltpu.PrefetchScalarGridSpec(
            num_scalar_prefetch=0,
            grid=(num_tiles,),
            in_specs=[
                pl.BlockSpec((tile_b, state_dim), lambda i: (i, 0)),    # state tile
                pl.BlockSpec((tile_b, action_dim), lambda i: (i, 0)),   # action tile
                pl.BlockSpec((nf, state_dim), lambda i: (0, 0)),        # W1_s^T
                pl.BlockSpec((nf, action_dim), lambda i: (0, 0)),       # W1_a^T
                pl.BlockSpec((nf, 1), lambda i: (0, 0)),                # b1
                pl.BlockSpec((nf, nf), lambda i: (0, 0)),               # W2^T
                pl.BlockSpec((nf, 1), lambda i: (0, 0)),                # b2
                pl.BlockSpec((n_out, nf), lambda i: (0, 0)),            # W3^T
                pl.BlockSpec((n_out, 1), lambda i: (0, 0)),             # b3
            ],
            # batch on the lane axis of the output -> full-width (lane-dense) stores
            out_specs=pl.BlockSpec((n_out, tile_b), lambda i: (0, i)),
        ),
        compiler_params=pltpu.CompilerParams(
            dimension_semantics=("parallel",),
        ),
    )(state, action, w1s_t, w1a_t, b1_c, w2_t, b2_c, w3_t, b3_c)

    q = q2d[:, :B].T            # (B, n_out); drop padded / edge-garbage batch columns
    # torch.squeeze: drop all size-1 dims (n_out == 1 -> (B,); B == 1 too -> scalar)
    return jnp.squeeze(q)


def init_params(key, n_input, n_features, n_output):
    """Deterministic init mirroring the PyTorch module:
    xavier_uniform with gain('relu')=sqrt(2) for h1/h2, gain('linear')=1 for h3,
    biases with PyTorch Linear default uniform(-1/sqrt(fan_in), 1/sqrt(fan_in))."""
    def xavier(k, fan_in, fan_out, gain):
        bound = gain * (6.0 / (fan_in + fan_out)) ** 0.5
        return jax.random.uniform(k, (fan_in, fan_out), jnp.float32, -bound, bound)

    def bias(k, fan_in, fan_out):
        bound = 1.0 / (fan_in ** 0.5)
        return jax.random.uniform(k, (1, fan_out), jnp.float32, -bound, bound)

    ks = jax.random.split(key, 6)
    g_relu = 2.0 ** 0.5
    w1 = xavier(ks[0], n_input, n_features, g_relu)
    b1 = bias(ks[1], n_input, n_features)
    w2 = xavier(ks[2], n_features, n_features, g_relu)
    b2 = bias(ks[3], n_features, n_features)
    w3 = xavier(ks[4], n_features, n_output, 1.0)
    b3 = bias(ks[5], n_features, n_output)
    return (w1, b1, w2, b2, w3, b3)


def _reference(state, action, params):
    w1, b1, w2, b2, w3, b3 = params
    sa = jnp.concatenate([state.astype(jnp.float32), action.astype(jnp.float32)], axis=1)
    h1 = jnp.maximum(sa @ w1 + b1, 0.0)
    h2 = jnp.maximum(h1 @ w2 + b2, 0.0)
    return jnp.squeeze(h2 @ w3 + b3)


if __name__ == "__main__":
    # Shapes consistent with the module: state dim 12, action dim 4
    # -> n_input = 16 (concatenated state_action dim), n_features = 32, n_output = 1.
    batch, state_dim, action_dim = 8, 12, 4
    n_input = state_dim + action_dim
    n_features, n_output = 32, 1

    key = jax.random.PRNGKey(0)
    k_state, k_action, k_params = jax.random.split(key, 3)
    state = jax.random.normal(k_state, (batch, state_dim), jnp.float32)
    action = jax.random.normal(k_action, (batch, action_dim), jnp.float32)
    params = init_params(k_params, n_input, n_features, n_output)

    q = jax.block_until_ready(critic_forward(state, action, params))
    q_ref = _reference(state, action, params)
    assert q.shape == (batch,), q.shape
    assert jnp.allclose(q, q_ref, atol=1e-4, rtol=1e-4), (q, q_ref)

    # Also exercise the ragged multi-tile path (edge blocks: B=300 -> 3 tiles of 128,
    # no wrapper-side padding; garbage columns beyond B are sliced off).
    batch2 = 300
    k_s2, k_a2 = jax.random.split(jax.random.PRNGKey(1), 2)
    state2 = jax.random.normal(k_s2, (batch2, state_dim), jnp.float32)
    action2 = jax.random.normal(k_a2, (batch2, action_dim), jnp.float32)
    q2 = jax.block_until_ready(critic_forward(state2, action2, params))
    q2_ref = _reference(state2, action2, params)
    assert q2.shape == (batch2,), q2.shape
    assert jnp.allclose(q2, q2_ref, atol=1e-4, rtol=1e-4)

    print("KERNEL_OK")
</pallas_src>

<mosaic_0001>
module attributes {stable_mosaic.version = 11 : i64} {
  func.func @critic_mlp_kernel(%arg0: i32, %arg1: memref<8x12xf32, #tpu.memory_space<vmem>>, %arg2: memref<8x4xf32, #tpu.memory_space<vmem>>, %arg3: memref<32x12xf32, #tpu.memory_space<vmem>>, %arg4: memref<32x4xf32, #tpu.memory_space<vmem>>, %arg5: memref<32x1xf32, #tpu.memory_space<vmem>>, %arg6: memref<32x32xf32, #tpu.memory_space<vmem>>, %arg7: memref<32x1xf32, #tpu.memory_space<vmem>>, %arg8: memref<1x32xf32, #tpu.memory_space<vmem>>, %arg9: memref<1x1xf32, #tpu.memory_space<vmem>>, %arg10: memref<1x8xf32, #tpu.memory_space<vmem>>) attributes {dimension_semantics = [#tpu.dimension_semantics<parallel>], iteration_bounds = array<i64: 1>, scalar_prefetch = 0 : i64, scratch_operands = 0 : i64, tpu.core_type = #tpu.core_type<tc>, window_params = [{transform_indices = @transform_0, window_bounds = array<i64: 8, 12>}, {transform_indices = @transform_1, window_bounds = array<i64: 8, 4>}, {pipeline_mode = #tpu.pipeline_mode<synchronous>, transform_indices = @transform_2, window_bounds = array<i64: 32, 12>}, {pipeline_mode = #tpu.pipeline_mode<synchronous>, transform_indices = @transform_3, window_bounds = array<i64: 32, 4>}, {pipeline_mode = #tpu.pipeline_mode<synchronous>, transform_indices = @transform_4, window_bounds = array<i64: 32, 1>}, {pipeline_mode = #tpu.pipeline_mode<synchronous>, transform_indices = @transform_5, window_bounds = array<i64: 32, 32>}, {pipeline_mode = #tpu.pipeline_mode<synchronous>, transform_indices = @transform_6, window_bounds = array<i64: 32, 1>}, {pipeline_mode = #tpu.pipeline_mode<synchronous>, transform_indices = @transform_7, window_bounds = array<i64: 1, 32>}, {pipeline_mode = #tpu.pipeline_mode<synchronous>, transform_indices = @transform_8, window_bounds = array<i64: 1, 1>}, {transform_indices = @transform_9, window_bounds = array<i64: 1, 8>}]} {
    %c0 = arith.constant 0 : index
    %c0_0 = arith.constant 0 : index
    %0 = vector.load %arg1[%c0, %c0_0] : memref<8x12xf32, #tpu.memory_space<vmem>>, vector<8x12xf32>
    %c0_1 = arith.constant 0 : index
    %c0_2 = arith.constant 0 : index
    %1 = vector.load %arg2[%c0_1, %c0_2] : memref<8x4xf32, #tpu.memory_space<vmem>>, vector<8x4xf32>
    %c0_3 = arith.constant 0 : index
    %c0_4 = arith.constant 0 : index
    %2 = vector.load %arg3[%c0_3, %c0_4] : memref<32x12xf32, #tpu.memory_space<vmem>>, vector<32x12xf32>
    %cst = arith.constant dense<0.000000e+00> : vector<32x8xf32>
    %3 = tpu.matmul %2, %0, %cst {dimension_numbers = #tpu.dot_dimension_numbers<[1], [1], [0], [0], [0, 0, 1, 0], [], []>} : vector<32x12xf32>, vector<8x12xf32>, vector<32x8xf32> -> vector<32x8xf32>
    %c0_5 = arith.constant 0 : index
    %c0_6 = arith.constant 0 : index
    %4 = vector.load %arg4[%c0_5, %c0_6] : memref<32x4xf32, #tpu.memory_space<vmem>>, vector<32x4xf32>
    %cst_7 = arith.constant dense<0.000000e+00> : vector<32x8xf32>
    %5 = tpu.matmul %4, %1, %cst_7 {dimension_numbers = #tpu.dot_dimension_numbers<[1], [1], [0], [0], [0, 0, 1, 0], [], []>} : vector<32x4xf32>, vector<8x4xf32>, vector<32x8xf32> -> vector<32x8xf32>
    %6 = arith.addf %3, %5 : vector<32x8xf32>
    %c0_8 = arith.constant 0 : index
    %c0_9 = arith.constant 0 : index
    %7 = vector.load %arg5[%c0_8, %c0_9] : memref<32x1xf32, #tpu.memory_space<vmem>>, vector<32x1xf32>
    %8 = vector.broadcast %7 : vector<32x1xf32> to vector<32x8xf32>
    %9 = arith.addf %6, %8 : vector<32x8xf32>
    %cst_10 = arith.constant 0.000000e+00 : f32
    %10 = vector.broadcast %cst_10 : f32 to vector<32x8xf32>
    %11 = arith.maximumf %9, %10 : vector<32x8xf32>
    %c0_11 = arith.constant 0 : index
    %c0_12 = arith.constant 0 : index
    %12 = vector.load %arg6[%c0_11, %c0_12] : memref<32x32xf32, #tpu.memory_space<vmem>>, vector<32x32xf32>
    %cst_13 = arith.constant dense<0.000000e+00> : vector<32x8xf32>
    %13 = tpu.matmul %12, %11, %cst_13 {dimension_numbers = #tpu.dot_dimension_numbers<[1], [0], [0], [1], [0, 0, 1, 1], [], []>} : vector<32x32xf32>, vector<32x8xf32>, vector<32x8xf32> -> vector<32x8xf32>
    %c0_14 = arith.constant 0 : index
    %c0_15 = arith.constant 0 : index
    %14 = vector.load %arg7[%c0_14, %c0_15] : memref<32x1xf32, #tpu.memory_space<vmem>>, vector<32x1xf32>
    %15 = vector.broadcast %14 : vector<32x1xf32> to vector<32x8xf32>
    %16 = arith.addf %13, %15 : vector<32x8xf32>
    %cst_16 = arith.constant 0.000000e+00 : f32
    %17 = vector.broadcast %cst_16 : f32 to vector<32x8xf32>
    %18 = arith.maximumf %16, %17 : vector<32x8xf32>
    %c0_17 = arith.constant 0 : index
    %c0_18 = arith.constant 0 : index
    %19 = vector.load %arg8[%c0_17, %c0_18] : memref<1x32xf32, #tpu.memory_space<vmem>>, vector<1x32xf32>
    %cst_19 = arith.constant dense<0.000000e+00> : vector<1x8xf32>
    %20 = tpu.matmul %19, %18, %cst_19 {dimension_numbers = #tpu.dot_dimension_numbers<[1], [0], [0], [1], [0, 0, 1, 1], [], []>} : vector<1x32xf32>, vector<32x8xf32>, vector<1x8xf32> -> vector<1x8xf32>
    %c0_20 = arith.constant 0 : index
    %c0_21 = arith.constant 0 : index
    %21 = vector.load %arg9[%c0_20, %c0_21] : memref<1x1xf32, #tpu.memory_space<vmem>>, vector<1x1xf32>
    %22 = vector.broadcast %21 : vector<1x1xf32> to vector<1x8xf32>
    %23 = arith.addf %20, %22 : vector<1x8xf32>
    %c0_22 = arith.constant 0 : index
    %c0_23 = arith.constant 0 : index
    %24 = vector.load %arg10[%c0_22, %c0_23] : memref<1x8xf32, #tpu.memory_space<vmem>>, vector<1x8xf32>
    tpu.vector_store %arg10[%c0_22, %c0_23], %23 {strides = array<i32>} : memref<1x8xf32, #tpu.memory_space<vmem>>, vector<1x8xf32>,
    return
  }
  func.func @transform_0(%arg0: i32) -> (i32, i32) {
    %c0_i32 = arith.constant 0 : i32
    %c0_i32_0 = arith.constant 0 : i32
    return %arg0, %c0_i32 : i32, i32
  }
  func.func @transform_1(%arg0: i32) -> (i32, i32) {
    %c0_i32 = arith.constant 0 : i32
    %c0_i32_0 = arith.constant 0 : i32
    return %arg0, %c0_i32 : i32, i32
  }
  func.func @transform_2(%arg0: i32) -> (i32, i32) {
    %c0_i32 = arith.constant 0 : i32
    %c0_i32_0 = arith.constant 0 : i32
    %c0_i32_1 = arith.constant 0 : i32
    return %c0_i32, %c0_i32_0 : i32, i32
  }
  func.func @transform_3(%arg0: i32) -> (i32, i32) {
    %c0_i32 = arith.constant 0 : i32
    %c0_i32_0 = arith.constant 0 : i32
    %c0_i32_1 = arith.constant 0 : i32
    return %c0_i32, %c0_i32_0 : i32, i32
  }
  func.func @transform_4(%arg0: i32) -> (i32, i32) {
    %c0_i32 = arith.constant 0 : i32
    %c0_i32_0 = arith.constant 0 : i32
    %c0_i32_1 = arith.constant 0 : i32
    return %c0_i32, %c0_i32_0 : i32, i32
  }
  func.func @transform_5(%arg0: i32) -> (i32, i32) {
    %c0_i32 = arith.constant 0 : i32
    %c0_i32_0 = arith.constant 0 : i32
    %c0_i32_1 = arith.constant 0 : i32
    return %c0_i32, %c0_i32_0 : i32, i32
  }
  func.func @transform_6(%arg0: i32) -> (i32, i32) {
    %c0_i32 = arith.constant 0 : i32
    %c0_i32_0 = arith.constant 0 : i32
    %c0_i32_1 = arith.constant 0 : i32
    return %c0_i32, %c0_i32_0 : i32, i32
  }
  func.func @transform_7(%arg0: i32) -> (i32, i32) {
    %c0_i32 = arith.constant 0 : i32
    %c0_i32_0 = arith.constant 0 : i32
    %c0_i32_1 = arith.constant 0 : i32
    return %c0_i32, %c0_i32_0 : i32, i32
  }
  func.func @transform_8(%arg0: i32) -> (i32, i32) {
    %c0_i32 = arith.constant 0 : i32
    %c0_i32_0 = arith.constant 0 : i32
    %c0_i32_1 = arith.constant 0 : i32
    return %c0_i32, %c0_i32_0 : i32, i32
  }
  func.func @transform_9(%arg0: i32) -> (i32, i32) {
    %c0_i32 = arith.constant 0 : i32
    %c0_i32_0 = arith.constant 0 : i32
    return %c0_i32, %arg0 : i32, i32
  }
}

</mosaic_0001>

<bundles_post_ra>
// kernel: tpu_custom_call.1
= control target key start
LH: loop header
LB: loop body
LE: loop exit
PB: predicated region body
PF: predicated region fallthrough
CT: control target
= control target key end

     0   :  { %s793_s0 = inlined_call_operand.vmem [shape: f32[8,12], index: 0, kind: input, shape index: {}]   ;;  %s794_s1 = inlined_call_operand.vmem [shape: f32[8,4], index: 1, kind: input, shape index: {}]   ;;  %s795_s2 = inlined_call_operand.vmem [shape: f32[32,12], index: 2, kind: input, shape index: {}]   ;;  %s796_s3 = inlined_call_operand.vmem [shape: f32[32,4], index: 3, kind: input, shape index: {}]   ;;  %s797_s4 = inlined_call_operand.vmem [shape: f32[32,1], index: 4, kind: input, shape index: {}]   ;;  %s798_s5 = inlined_call_operand.vmem [shape: f32[32,32], index: 5, kind: input, shape index: {}]   ;;  %s799_s6 = inlined_call_operand.vmem [shape: f32[32,1], index: 6, kind: input, shape index: {}]   ;;  %s800_s7 = inlined_call_operand.vmem [shape: f32[1,32], index: 7, kind: input, shape index: {}]   ;;  %s801_s8 = inlined_call_operand.<no memory space> [shape: f32[1,1], index: 8, kind: input, shape index: {}]   ;;  %s802_s9 = inlined_call_operand.hbm [shape: f32[1,8], index: 9, kind: output, shape index: {}]  }
   0x1   :  { %v14_v0 = vstv %s801_s8 }
   0x2   :  { %15 = vst [vmem:[#allocation2] sm:$0x1] %v14_v0 }
   0x3   :  { %v36_v1 = vld [vmem:[%s794_s1] sm:$0xff]  ;;  %vm45_vm0 = vcmask 31744   ;;  %vm146_vm1 = vcmask 97280   ;;  %v42_v4 = vld [vmem:[%s796_s3 + $0x8] sm:$0xff]  ;;  %v637_v5 = vmov 0   ;;  %v43_v6 = vld [vmem:[%s796_s3 + $0x10] sm:$0xff] }
   0x4   :  { %v41_v2 = vld [vmem:[%s796_s3] sm:$0xff]  ;;  %547 = vmatprep.subr.msk.mxu0 %vm45_vm0, %v36_v1  ;;  %611 = vset.pattern.permute.xlu0 %v637_v5  ;;  %v249_v8 = vld [vmem:[%s797_s4 + $0x10] sm:$0xff]  ;;  %v248_v9 = vld [vmem:[%s797_s4 + $0x8] sm:$0xff] }
   0x5   :  { %549 = vmatprep.mubr.msk.f32.mxu0 %vm45_vm0, %v41_v2  ;;  %v35_v3 = vld [vmem:[%s793_s0] sm:$0xff]  ;;  %548 = vmatpush3.xpose.msk.msra.mxu0 %vm45_vm0, %v36_v1  ;;  %v44_v10 = vld [vmem:[%s796_s3 + $0x18] sm:$0xff] }
   0x6   :  { %555 = vmatprep.subr.msk.mxu0 %vm146_vm1, %v35_v3  ;;  %v247_v7 = vld [vmem:[%s797_s4] sm:$0xff]  ;;  %612 = vset.pattern.permute.xlu1 %v637_v5  ;;  %v250_v11 = vld [vmem:[%s797_s4 + $0x18] sm:$0xff] }
   0x7   :  { %253 = vperm.xlu0 %611, %v247_v7   ;;  %263 = vperm.xlu1 %612, %v249_v8  }
   0x8   :  { %550 = vmatmul.mubr.msk.f32.vlgmr.msra.gmra.mrb[0].mxu0 %vm45_vm0, %v42_v4 }
   0x9   :  { %556 = vmatpush3.xpose.msk.msra.mxu0 %vm146_vm1, %v35_v3  ;;  %552 = vmatprep.mubr.msk.f32.mxu0 %vm45_vm0, %v43_v6 }
   0xa   :  { %16 = vsyncpa [#allocation4], 0  ;;  %v37_v12 = vld [vmem:[%s795_s2] sm:$0xff]  ;;  %v38_v14 = vld [vmem:[%s795_s2 + $0x8] sm:$0xff]  ;;  %vm307_vm2 = vcmask 261120   ;;  %v638_v43 = vmov 0.0|0.0   ;;  %v416_v0 = vlaneseq }
   0xb   :  { %258 = vperm.xlu0 %611, %v248_v9   ;;  %v283_v13 = vld [vmem:[%s799_s6] sm:$0xff]  ;;  %268 = vperm.xlu1 %612, %v250_v11   ;;  %v284_v15 = vld [vmem:[%s799_s6 + $0x8] sm:$0xff]  ;;  %v39_v16 = vld [vmem:[%s795_s2 + $0x10] sm:$0xff]  ;;  %vm639_vm3 = vmmov 0   ;;  %v640_v44 = vmov 0.0   ;;  %s641_s25 = smov [#allocation3]  }
   0xc   :  { %553 = vmatmul.mubr.msk.f32.gmra.mrb[2].mxu0 %vm45_vm0, %v44_v10  ;;  %v285_v17 = vld [vmem:[%s799_s6 + $0x10] sm:$0xff]  ;;  %v40_v18 = vld [vmem:[%s795_s2 + $0x18] sm:$0xff]  ;;  %v410_v20 = vld [vmem:[#allocation2] sm:$0x1]  ;;  %v417_v1 = vshrl.u32 %v416_v0, 7  ;;  %s501_s26 = sshll.u32 %s641_s25, 4  ;;  %s502_s26 = int_to_ptr.vmem [resolvable:$true] %s501_s26 }
   0xd   :  { %557 = vmatprep.mubr.msk.f32.mxu0 %vm146_vm1, %v37_v12  ;;  %v286_v19 = vld [vmem:[%s799_s6 + $0x18] sm:$0xff]  ;;  %v279_v21 = vld [vmem:[%s798_s5] sm:$0xff]  ;;  %v280_v40 = vld [vmem:[%s798_s5 + $0x8] sm:$0xff]  ;;  %vm493_vm4 = vcmask 57344   ;;  %s613_s27 = scalar_lea.vmem %s502_s26, 16  ;;  %s617_s28 = scalar_lea.vmem %s502_s26, 32 }
   0xe   :  { %571 = vmatprep.mubr.msk.f32.mxu1 %vm307_vm2, %v279_v21  ;;  %v281_v41 = vld [vmem:[%s798_s5 + $0x10] sm:$0xff]  ;;  %v282_v42 = vld [vmem:[%s798_s5 + $0x18] sm:$0xff]  ;;  %v409_v63 = vld [vmem:[%s800_s7] sm:$0x1]  ;;  %v418_v2 = vsub.s32 0, %v417_v1  ;;  %p614_p0 = scmp.ne.s32.totalorder %s502_s26, %s613_s27  ;;  %p618_p1 = scmp.lt.s32.totalorder %s502_s26, %s502_s26 }
   0xf   :  { %289 = vperm.xlu0 %611, %v283_v13   ;;  %294 = vperm.xlu1 %612, %v284_v15   ;;  %p619_p2 = scmp.lt.s32.totalorder %s617_s28, %s613_s27 }
  0x10   :  { %558 = vmatmul.mubr.msk.f32.vlgmr.msra.gmra.mrb[0].mxu0 %vm146_vm1, %v38_v14 }
  0x11   :  { %560 = vmatprep.mubr.msk.f32.mxu0 %vm146_vm1, %v39_v16  ;;  %p620_p3 = por %p619_p2, %p618_p1 }
  0x13   :  { %299 = vperm.xlu0 %611, %v285_v17   ;;  %304 = vperm.xlu1 %612, %v286_v19   ;;  %p621_p4 = pnand %p620_p3, %p614_p0 }
  0x14   :  { %561 = vmatmul.mubr.msk.f32.gmra.mrb[2].mxu0 %vm146_vm1, %v40_v18 }
  0x17   :  { %413 = vperm.xlu0 %611, %v410_v20  }
  0x86   :  { %v254_v22 = vpop.permute.xlu0 %253  ;;  %v264_v23 = vpop.permute.xlu1 %263 }
  0x8a   :  { %v259_v24 = vpop.permute.xlu0 %258  ;;  %v269_v30 = vpop.permute.xlu1 %268 }
  0x8e   :  { %v295_v45 = vpop.permute.xlu1 %294  ;;  %v290_v46 = vpop.permute.xlu0 %289 }
  0x92   :  { %v305_v52 = vpop.permute.xlu1 %304  ;;  %v300_v55 = vpop.permute.xlu0 %299 }
  0x96   :  { %v414_v3 = vpop.permute.xlu0 %413 }
  0x97   :  { %v419_v4 = vrot.slane %v414_v3, %v418_v2 }
  0xe3   :  { %v559_v25 = vpop.f32.mrb[0].mxu0 }
  0xe4   :  { %v272_v26 = vadd.f32 %v559_v25, %v259_v24  ;;  %v228_v27 = vpop.f32.mrb[1].mxu0 }
  0xe5   :  { %v271_v28 = vadd.f32 %v254_v22, %v228_v27 }
  0xe6   :  { %v276_v29 = vmax.f32 %v272_v26, 0.0 }
  0xe7   :  { %v275_v31 = vmax.f32 %v271_v28, 0.0  ;;  %v562_v32 = vpop.f32.mrb[2].mxu0 }
  0xe8   :  { %v274_v33 = vadd.f32 %v562_v32, %v269_v30  ;;  %v238_v34 = vpop.f32.mrb[3].mxu0 }
  0xe9   :  { %v273_v35 = vadd.f32 %v264_v23, %v238_v34  ;;  %v588_v36 = vpack.c.bf16 %v276_v29, %v275_v31 }
  0xea   :  { %v278_v37 = vmax.f32 %v274_v33, 0.0 }
  0xeb   :  { %v277_v38 = vmax.f32 %v273_v35, 0.0  ;;  %589 = vmatprep.subr.bf16.mxu1 %v588_v36 }
  0xec   :  { %591 = vmatpush3.bf16.msra.mxu1 %v588_v36 }
  0xed   :  { %v592_v39 = vpack.c.bf16 %v278_v37, %v277_v38 }
  0xef   :  { %593 = vmatprep.subr.bf16.mxu1 %v592_v39 }
  0xf0   :  { %595 = vmatpush3.bf16.msra.mxu1 %v592_v39 }
  0xf1   :  { %596 = vmatprep.subr.bf16.mxu1 %v638_v43 }
  0xf3   :  { %572 = vmatmul.mubr.msk.f32.vlgmr.msra.gmra.mrb[0].mxu1 %vm307_vm2, %v280_v40 }
  0xf4   :  { %574 = vmatprep.mubr.msk.f32.mxu1 %vm307_vm2, %v281_v41 }
  0xf7   :  { %575 = vmatmul.mubr.msk.f32.gmra.mrb[2].mxu1 %vm307_vm2, %v282_v42 }
  0xf8   :  { %585 = vmatprep.mubr.msk.f32.mxu1 %vm639_vm3, %v640_v44 }
 0x1c6   :  { %v573_v47 = vpop.f32.mrb[0].mxu1 }
 0x1c7   :  { %v392_v48 = vadd.f32 %v573_v47, %v295_v45  ;;  %v386_v49 = vpop.f32.mrb[1].mxu1 }
 0x1c8   :  { %v387_v50 = vadd.f32 %v386_v49, %v290_v46 }
 0x1c9   :  { %v406_v51 = vmax.f32 %v392_v48, 0.0 }
 0x1ca   :  { %v405_v53 = vmax.f32 %v387_v50, 0.0  ;;  %v576_v54 = vpop.f32.mrb[2].mxu1 }
 0x1cb   :  { %v402_v56 = vadd.f32 %v576_v54, %v305_v52  ;;  %v396_v57 = vpop.f32.mrb[3].mxu1 }
 0x1cc   :  { %v597_v58 = vpack.c.bf16 %v406_v51, %v405_v53  ;;  %v397_v59 = vadd.f32 %v396_v57, %v300_v55 }
 0x1cd   :  { %v408_v60 = vmax.f32 %v402_v56, 0.0 }
 0x1ce   :  { %v407_v61 = vmax.f32 %v397_v59, 0.0  ;;  %598 = vmatpush3.bf16.msra.mxu1 %v597_v58 }
 0x1cf   :  { %599 = vmatprep.subr.bf16.mxu1 %v638_v43 }
 0x1d0   :  { %v600_v62 = vpack.c.bf16 %v408_v60, %v407_v61 }
 0x1d2   :  { %601 = vmatpush3.bf16.msra.mxu1 %v600_v62 }
 0x1d5   :  { %586 = vmatmul.mubr.msk.f32.vlgmr.msra.gmra.mrb[4].mxu1 %vm307_vm2, %v409_v63 }
 0x2a8   :  { %v489_v5 = vpop.f32.mrb[4].mxu1 }
 0x2a9   :  { %v490_v6 = vadd.f32 %v489_v5, %v419_v4  ;;  %v587_v7 = vpop.f32.mrb[5].mxu1 }
 0x2ab   :  { %494 = vst.msk [vmem:[#allocation3] sm:$0x1] %vm493_vm4, %v490_v6 }
 0x2ac   :  { %624 = shalt.err (!%p621_p4)
}
 0x2ad   :  { %s625_s30 = scalar_lea.hbm %s802_s9, 16 }
 0x2ae   :  { %p626_p5 = scmp.ne.s32.totalorder %s802_s9, %s625_s30  ;;  %p629_p6 = scmp.lt.u32.totalorder %s625_s30, %s802_s9 }
 0x2b0   :  { %p631_p7 = pnand %p629_p6, %p626_p5 }
 0x2b2   :  { %634 = shalt.err (!%p631_p7)
}
 0x2b3   :  { %504 = dma.vmem_to_hbm [thread:$0]  %s502_s26, 16, %s802_s9, [#allocation4]  }
 0x2b4   :  { %635 = dma.done.wait [#allocation4], 16  }
 0x2b5   :  { %636 = vsyncadd [#allocation4], 4294967280 }
 0x2b6   :  { %508 = vsyncpa [#allocation4], 1 }

</bundles_post_ra>
